<compile_context>
chip_gen: v5e
topology: v5e:2x2
jax: 0.10.0
libtpu: 0.0.40
codegen_flags: <defaults>
</compile_context>

<pallas_src>
import jax
import jax.numpy as jnp
from jax import lax
from jax.experimental import pallas as pl
from jax.experimental.pallas import tpu as pltpu

# ---------------- config (small, consistent with the module) ----------------
B = 2
T = 8                     # block_size (query == key tokens, self-attention)
D_MODEL = 32
N_HEADS = 4
HEAD_SIZE = D_MODEL // N_HEADS
D_FFD = 64
MASKED = True             # GPT-2-like causal self-attention
LN_EPS = 1e-5
LEAKY_SLOPE = 0.01        # nn.LeakyReLU default
SCALE = D_MODEL ** -0.5   # Head scales by C**-0.5 with C == d_model (faithful)
NEG_INF = -1e30           # large finite negative (no NaN risk on masked rows)

BT = B * T                # 16  (batch folded into one slab)
HBT = N_HEADS * BT        # 64


# ------------------------------ kernel body ---------------------------------
def _layernorm(z, g, b):
    mu = jnp.mean(z, axis=-1, keepdims=True)
    var = jnp.mean((z - mu) ** 2, axis=-1, keepdims=True)
    return (z - mu) * lax.rsqrt(var + LN_EPS) * g + b


def block_self_attention_kernel(x_ref, wqkv_ref, pw_ref, w1_ref, w2_ref,
                                vec_ref, hmask_ref, smask_ref, seg_ref,
                                rep_ref, out_ref):
    d = D_MODEL

    x = x_ref[...]                       # (BT, D)
    vec = vec_ref[...]                   # (8, D_FFD) sublane-major param slab

    # row slices (sublane picks) + offset-0 lane slices: no lane rotations
    g1 = vec[0:1, :d]
    be1 = vec[1:2, :d]
    g2 = vec[2:3, :d]
    be2 = vec[3:4, :d]
    pb = vec[4:5, :d]
    b2 = vec[5:6, :d]
    b1 = vec[6:7, :D_FFD]

    # ---- LN1 + fused QKV projection (one 128-lane-wide MXU pass) ----
    xn1 = _layernorm(x, g1, be1)
    qkv = jnp.dot(xn1, wqkv_ref[...],
                  preferred_element_type=jnp.float32)          # (BT, 128)
    q = qkv[:, 0 * d:1 * d]
    k = qkv[:, 1 * d:2 * d]
    v = qkv[:, 2 * d:3 * d]

    # ---- head expansion on the idle MXU + precomputed channel mask ----
    hmask = hmask_ref[...]                                     # (HBT, D) const
    rep = rep_ref[...]                                         # (HBT, BT) const
    k_stack = jnp.dot(rep, k, preferred_element_type=jnp.float32) * hmask
    v_stack = jnp.dot(rep, v, preferred_element_type=jnp.float32) * hmask

    # ---- all (batch, head) scores in ONE matmul, precomputed additive mask ----
    s = jnp.einsum('ic,jc->ij', q, k_stack,
                   preferred_element_type=jnp.float32) * SCALE + smask_ref[...]
    m = jnp.max(s, axis=-1, keepdims=True)
    e = jnp.exp(s - m)                                         # masked -> 0
    denom = jnp.dot(e, seg_ref[...],
                    preferred_element_type=jnp.float32)        # per-head sums
    w = e * pl.reciprocal(denom, approx=True)                  # EUP divide
    o = jnp.dot(w, v_stack, preferred_element_type=jnp.float32)   # (BT, D)
    attn = jnp.dot(o, pw_ref[...], preferred_element_type=jnp.float32) + pb
    x = x + attn

    # ---- LN2 + feed-forward + residual ----
    xn2 = _layernorm(x, g2, be2)
    hmid = jnp.dot(xn2, w1_ref[...], preferred_element_type=jnp.float32) + b1
    hmid = jnp.where(hmid >= 0, hmid, LEAKY_SLOPE * hmid)      # LeakyReLU
    ff = jnp.dot(hmid, w2_ref[...], preferred_element_type=jnp.float32) + b2
    x = x + ff

    # lane-dense 128-wide store: [block output | K (all heads) | V | pad(=x)]
    out_ref[...] = jnp.concatenate([x, k, v, x], axis=-1)      # (BT, 128)


# -------------------- one-time packing (outside the call path) ----------------
def prepare_inputs(params):
    """Pack parameters + precompute all constant masks ONCE."""
    d = D_MODEL
    w_qkv = jnp.concatenate(
        [params["wq"], params["wk"], params["wv"],
         jnp.zeros((d, d), jnp.float32)], axis=1)              # (32, 128)

    vec8 = jnp.zeros((8, D_FFD), jnp.float32)
    vec8 = vec8.at[0, :d].set(params["g1"][0])
    vec8 = vec8.at[1, :d].set(params["be1"][0])
    vec8 = vec8.at[2, :d].set(params["g2"][0])
    vec8 = vec8.at[3, :d].set(params["be2"][0])
    vec8 = vec8.at[4, :d].set(params["pb"][0])
    vec8 = vec8.at[5, :d].set(params["b2"][0])
    vec8 = vec8.at[6, :].set(params["b1"][0])

    # per-head channel mask: row r of stacked K/V belongs to head r // BT
    r = jnp.arange(HBT)[:, None]
    c = jnp.arange(d)[None, :]
    head_mask = ((r // BT) == (c // HEAD_SIZE)).astype(jnp.float32)   # (64, 32)

    # additive score mask on the (BT, H*BT) wide score matrix
    qi = jnp.arange(BT)[:, None]
    kj = jnp.arange(HBT)[None, :] % BT
    valid = (qi // T) == (kj // T)                                    # same batch
    if MASKED:
        valid = valid & ((kj % T) <= (qi % T))                        # causal
    smask = jnp.where(valid, 0.0, NEG_INF).astype(jnp.float32)        # (16, 64)

    # block-diagonal ones: broadcast per-head softmax denominators (MXU)
    sr = jnp.arange(HBT)[:, None] // BT
    sc = jnp.arange(HBT)[None, :] // BT
    seg_ones = (sr == sc).astype(jnp.float32)                         # (64, 64)

    # head replication matrix (MXU sublane replication of K/V)
    rep_mat = jnp.tile(jnp.eye(BT, dtype=jnp.float32), (N_HEADS, 1))  # (64, 16)

    return {
        "w_qkv": w_qkv, "pw": params["pw"], "w1": params["w1"],
        "w2": params["w2"], "vec8": vec8, "head_mask": head_mask,
        "smask": smask, "seg_ones": seg_ones, "rep_mat": rep_mat,
    }


# ------------------------------ jitted wrapper --------------------------------
@jax.jit
def block_self_attention(x, prep):
    """x: (B, T, D). Returns (out (B,T,D), hidden = [(k_h, v_h)] per head)."""
    b, t, d = x.shape
    bt = b * t
    x2d = x.reshape(bt, d)

    out_slab = pl.pallas_call(
        block_self_attention_kernel,
        out_shape=jax.ShapeDtypeStruct((bt, 4 * d), jnp.float32),
        in_specs=[pl.BlockSpec(memory_space=pltpu.MemorySpace.VMEM)] * 9,
        out_specs=pl.BlockSpec(memory_space=pltpu.MemorySpace.VMEM),
    )(x2d, prep["w_qkv"], prep["pw"], prep["w1"], prep["w2"], prep["vec8"],
      prep["head_mask"], prep["smask"], prep["seg_ones"])

    out = out_slab[:, 0 * d:1 * d].reshape(b, t, d)
    k_all = out_slab[:, 1 * d:2 * d].reshape(b, t, d)
    v_all = out_slab[:, 2 * d:3 * d].reshape(b, t, d)
    hidden = [(k_all[..., h * HEAD_SIZE:(h + 1) * HEAD_SIZE],
               v_all[..., h * HEAD_SIZE:(h + 1) * HEAD_SIZE])
              for h in range(N_HEADS)]
    return out, hidden


# fix arg plumbing: kernel takes 10 tensor inputs (rep_mat included)
def _call_impl(x2d, prep, bt, d):
    return pl.pallas_call(
        block_self_attention_kernel,
        out_shape=jax.ShapeDtypeStruct((bt, 4 * d), jnp.float32),
        in_specs=[pl.BlockSpec(memory_space=pltpu.MemorySpace.VMEM)] * 10,
        out_specs=pl.BlockSpec(memory_space=pltpu.MemorySpace.VMEM),
    )(x2d, prep["w_qkv"], prep["pw"], prep["w1"], prep["w2"], prep["vec8"],
      prep["head_mask"], prep["smask"], prep["seg_ones"], prep["rep_mat"])


@jax.jit
def block_self_attention(x, prep):  # noqa: F811 (final definition, 10 inputs)
    b, t, d = x.shape
    bt = b * t
    x2d = x.reshape(bt, d)
    out_slab = _call_impl(x2d, prep, bt, d)
    out = out_slab[:, 0 * d:1 * d].reshape(b, t, d)
    k_all = out_slab[:, 1 * d:2 * d].reshape(b, t, d)
    v_all = out_slab[:, 2 * d:3 * d].reshape(b, t, d)
    hidden = [(k_all[..., h * HEAD_SIZE:(h + 1) * HEAD_SIZE],
               v_all[..., h * HEAD_SIZE:(h + 1) * HEAD_SIZE])
              for h in range(N_HEADS)]
    return out, hidden


# ------------------------- deterministic params -------------------------------
def make_params(key):
    ks = jax.random.split(key, 16)
    it = iter(ks)
    w = lambda shape, s=0.05: (s * jax.random.normal(next(it), shape)).astype(jnp.float32)
    p = {}
    p["g1"] = (1.0 + 0.01 * jax.random.normal(next(it), (1, D_MODEL))).astype(jnp.float32)
    p["be1"] = w((1, D_MODEL), 0.01)
    p["g2"] = (1.0 + 0.01 * jax.random.normal(next(it), (1, D_MODEL))).astype(jnp.float32)
    p["be2"] = w((1, D_MODEL), 0.01)
    # attention: per-head weights stacked along output columns (== torch.cat of heads)
    p["wq"] = w((D_MODEL, D_MODEL))
    p["wk"] = w((D_MODEL, D_MODEL))
    p["wv"] = w((D_MODEL, D_MODEL))
    p["pw"] = w((D_MODEL, D_MODEL))
    p["pb"] = w((1, D_MODEL), 0.01)
    # feed-forward
    p["w1"] = w((D_MODEL, D_FFD))
    p["b1"] = w((1, D_FFD), 0.01)
    p["w2"] = w((D_FFD, D_MODEL))
    p["b2"] = w((1, D_MODEL), 0.01)
    return p


# ------------------------- pure-JAX reference ---------------------------------
def reference(x, p):
    def ln(z, g, b):
        mu = z.mean(-1, keepdims=True)
        var = ((z - mu) ** 2).mean(-1, keepdims=True)
        return (z - mu) / jnp.sqrt(var + LN_EPS) * g[0] + b[0]

    b_, t_, d_ = x.shape
    xn1 = ln(x, p["g1"], p["be1"])
    Q = xn1 @ p["wq"]
    K = xn1 @ p["wk"]
    V = xn1 @ p["wv"]
    Qh = Q.reshape(b_, t_, N_HEADS, HEAD_SIZE).transpose(0, 2, 1, 3)
    Kh = K.reshape(b_, t_, N_HEADS, HEAD_SIZE).transpose(0, 2, 1, 3)
    Vh = V.reshape(b_, t_, N_HEADS, HEAD_SIZE).transpose(0, 2, 1, 3)
    s = (Qh @ Kh.transpose(0, 1, 3, 2)) * (d_ ** -0.5)
    if MASKED:
        mask = jnp.tril(jnp.ones((t_, t_)))
        s = jnp.where(mask == 0, -jnp.inf, s)
    w_ = jax.nn.softmax(s, axis=-1)
    o = (w_ @ Vh).transpose(0, 2, 1, 3).reshape(b_, t_, d_)
    x = x + (o @ p["pw"] + p["pb"][0])
    xn2 = ln(x, p["g2"], p["be2"])
    h = xn2 @ p["w1"] + p["b1"][0]
    h = jnp.where(h >= 0, h, LEAKY_SLOPE * h)
    x = x + (h @ p["w2"] + p["b2"][0])
    return x, (K, V)


# ------------------------------------ main ------------------------------------
if __name__ == "__main__":
    key = jax.random.PRNGKey(0)
    kx, kp = jax.random.split(key)
    x = jax.random.normal(kx, (B, T, D_MODEL), dtype=jnp.float32)
    params = make_params(kp)

    prep = prepare_inputs(params)                # one-time packing, not per call
    out, hidden = block_self_attention(x, prep)  # single jitted dispatch
    out = jax.block_until_ready(out)

    ref_out, (ref_k, ref_v) = reference(x, params)
    assert out.shape == (B, T, D_MODEL)
    assert jnp.allclose(out, ref_out, atol=2e-3, rtol=2e-3), "output mismatch vs reference"

    k_cat = jnp.concatenate([h[0] for h in hidden], axis=-1)
    v_cat = jnp.concatenate([h[1] for h in hidden], axis=-1)
    assert jnp.allclose(k_cat, ref_k, atol=2e-3, rtol=2e-3), "hidden K mismatch"
    assert jnp.allclose(v_cat, ref_v, atol=2e-3, rtol=2e-3), "hidden V mismatch"

    print("KERNEL_OK")
</pallas_src>

<mosaic_0001>
module attributes {stable_mosaic.version = 11 : i64} {
  func.func @block_self_attention_kernel(%arg0: memref<16x32xf32, #tpu.memory_space<vmem>>, %arg1: memref<32x128xf32, #tpu.memory_space<vmem>>, %arg2: memref<32x32xf32, #tpu.memory_space<vmem>>, %arg3: memref<32x64xf32, #tpu.memory_space<vmem>>, %arg4: memref<64x32xf32, #tpu.memory_space<vmem>>, %arg5: memref<8x64xf32, #tpu.memory_space<vmem>>, %arg6: memref<64x32xf32, #tpu.memory_space<vmem>>, %arg7: memref<16x64xf32, #tpu.memory_space<vmem>>, %arg8: memref<64x64xf32, #tpu.memory_space<vmem>>, %arg9: memref<64x16xf32, #tpu.memory_space<vmem>>, %arg10: memref<16x128xf32, #tpu.memory_space<vmem>>) attributes {dimension_semantics = [], scalar_prefetch = 0 : i64, scratch_operands = 0 : i64, tpu.core_type = #tpu.core_type<tc>} {
    %c0 = arith.constant 0 : index
    %c0_0 = arith.constant 0 : index
    %0 = vector.load %arg0[%c0, %c0_0] : memref<16x32xf32, #tpu.memory_space<vmem>>, vector<16x32xf32>
    %c0_1 = arith.constant 0 : index
    %c0_2 = arith.constant 0 : index
    %1 = vector.load %arg5[%c0_1, %c0_2] : memref<8x64xf32, #tpu.memory_space<vmem>>, vector<8x64xf32>
    %2 = vector.extract_strided_slice %1 {offsets = [0, 0], sizes = [1, 32], strides = [1, 1]} : vector<8x64xf32> to vector<1x32xf32>
    %3 = vector.extract_strided_slice %1 {offsets = [1, 0], sizes = [1, 32], strides = [1, 1]} : vector<8x64xf32> to vector<1x32xf32>
    %4 = vector.extract_strided_slice %1 {offsets = [2, 0], sizes = [1, 32], strides = [1, 1]} : vector<8x64xf32> to vector<1x32xf32>
    %5 = vector.extract_strided_slice %1 {offsets = [3, 0], sizes = [1, 32], strides = [1, 1]} : vector<8x64xf32> to vector<1x32xf32>
    %6 = vector.extract_strided_slice %1 {offsets = [4, 0], sizes = [1, 32], strides = [1, 1]} : vector<8x64xf32> to vector<1x32xf32>
    %7 = vector.extract_strided_slice %1 {offsets = [5, 0], sizes = [1, 32], strides = [1, 1]} : vector<8x64xf32> to vector<1x32xf32>
    %8 = vector.extract_strided_slice %1 {offsets = [6, 0], sizes = [1, 64], strides = [1, 1]} : vector<8x64xf32> to vector<1x64xf32>
    %cst = arith.constant dense<0.000000e+00> : vector<16xf32>
    %9 = vector.multi_reduction <add>, %0, %cst [1] : vector<16x32xf32> to vector<16xf32>
    %10 = vector.shape_cast %9 : vector<16xf32> to vector<16x1xf32>
    %cst_3 = arith.constant 3.200000e+01 : f32
    %11 = vector.broadcast %cst_3 : f32 to vector<16x1xf32>
    %12 = arith.divf %10, %11 : vector<16x1xf32>
    %13 = vector.broadcast %12 : vector<16x1xf32> to vector<16x32xf32>
    %14 = arith.subf %0, %13 : vector<16x32xf32>
    %15 = arith.mulf %14, %14 : vector<16x32xf32>
    %cst_4 = arith.constant dense<0.000000e+00> : vector<16xf32>
    %16 = vector.multi_reduction <add>, %15, %cst_4 [1] : vector<16x32xf32> to vector<16xf32>
    %17 = vector.shape_cast %16 : vector<16xf32> to vector<16x1xf32>
    %cst_5 = arith.constant 3.200000e+01 : f32
    %18 = vector.broadcast %cst_5 : f32 to vector<16x1xf32>
    %19 = arith.divf %17, %18 : vector<16x1xf32>
    %20 = vector.broadcast %12 : vector<16x1xf32> to vector<16x32xf32>
    %21 = arith.subf %0, %20 : vector<16x32xf32>
    %cst_6 = arith.constant 9.99999974E-6 : f32
    %22 = vector.broadcast %cst_6 : f32 to vector<16x1xf32>
    %23 = arith.addf %19, %22 : vector<16x1xf32>
    %24 = math.rsqrt %23 : vector<16x1xf32>
    %25 = vector.broadcast %24 : vector<16x1xf32> to vector<16x32xf32>
    %26 = arith.mulf %21, %25 : vector<16x32xf32>
    %27 = vector.broadcast %2 : vector<1x32xf32> to vector<16x32xf32>
    %28 = arith.mulf %26, %27 : vector<16x32xf32>
    %29 = vector.broadcast %3 : vector<1x32xf32> to vector<16x32xf32>
    %30 = arith.addf %28, %29 : vector<16x32xf32>
    %c0_7 = arith.constant 0 : index
    %c0_8 = arith.constant 0 : index
    %31 = vector.load %arg1[%c0_7, %c0_8] : memref<32x128xf32, #tpu.memory_space<vmem>>, vector<32x128xf32>
    %cst_9 = arith.constant dense<0.000000e+00> : vector<16x128xf32>
    %32 = tpu.matmul %30, %31, %cst_9 {dimension_numbers = #tpu.dot_dimension_numbers<[1], [0], [0], [1], [0, 0, 1, 1], [], []>} : vector<16x32xf32>, vector<32x128xf32>, vector<16x128xf32> -> vector<16x128xf32>
    %33 = vector.extract_strided_slice %32 {offsets = [0, 0], sizes = [16, 32], strides = [1, 1]} : vector<16x128xf32> to vector<16x32xf32>
    %34 = vector.extract_strided_slice %32 {offsets = [0, 32], sizes = [16, 32], strides = [1, 1]} : vector<16x128xf32> to vector<16x32xf32>
    %35 = vector.extract_strided_slice %32 {offsets = [0, 64], sizes = [16, 32], strides = [1, 1]} : vector<16x128xf32> to vector<16x32xf32>
    %c0_10 = arith.constant 0 : index
    %c0_11 = arith.constant 0 : index
    %36 = vector.load %arg6[%c0_10, %c0_11] : memref<64x32xf32, #tpu.memory_space<vmem>>, vector<64x32xf32>
    %c0_12 = arith.constant 0 : index
    %c0_13 = arith.constant 0 : index
    %37 = vector.load %arg9[%c0_12, %c0_13] : memref<64x16xf32, #tpu.memory_space<vmem>>, vector<64x16xf32>
    %cst_14 = arith.constant dense<0.000000e+00> : vector<64x32xf32>
    %38 = tpu.matmul %37, %34, %cst_14 {dimension_numbers = #tpu.dot_dimension_numbers<[1], [0], [0], [1], [0, 0, 1, 1], [], []>} : vector<64x16xf32>, vector<16x32xf32>, vector<64x32xf32> -> vector<64x32xf32>
    %39 = arith.mulf %38, %36 : vector<64x32xf32>
    %cst_15 = arith.constant dense<0.000000e+00> : vector<64x32xf32>
    %40 = tpu.matmul %37, %35, %cst_15 {dimension_numbers = #tpu.dot_dimension_numbers<[1], [0], [0], [1], [0, 0, 1, 1], [], []>} : vector<64x16xf32>, vector<16x32xf32>, vector<64x32xf32> -> vector<64x32xf32>
    %41 = arith.mulf %40, %36 : vector<64x32xf32>
    "tpu.trace_start"() <{level = 10 : i32, message = "ic,jc->ij"}> : () -> ()
    %cst_16 = arith.constant dense<0.000000e+00> : vector<16x64xf32>
    %42 = tpu.matmul %33, %39, %cst_16 {dimension_numbers = #tpu.dot_dimension_numbers<[1], [1], [0], [0], [0, 0, 1, 0], [], []>} : vector<16x32xf32>, vector<64x32xf32>, vector<16x64xf32> -> vector<16x64xf32>
    "tpu.trace_stop"() : () -> ()
    %cst_17 = arith.constant 0.176776692 : f32
    %43 = vector.broadcast %cst_17 : f32 to vector<16x64xf32>
    %44 = arith.mulf %42, %43 : vector<16x64xf32>
    %c0_18 = arith.constant 0 : index
    %c0_19 = arith.constant 0 : index
    %45 = vector.load %arg7[%c0_18, %c0_19] : memref<16x64xf32, #tpu.memory_space<vmem>>, vector<16x64xf32>
    %46 = arith.addf %44, %45 : vector<16x64xf32>
    %cst_20 = arith.constant dense<0xFF800000> : vector<16xf32>
    %47 = vector.multi_reduction <maximumf>, %46, %cst_20 [1] : vector<16x64xf32> to vector<16xf32>
    %48 = vector.shape_cast %47 : vector<16xf32> to vector<16x1xf32>
    %49 = vector.broadcast %48 : vector<16x1xf32> to vector<16x64xf32>
    %50 = arith.subf %46, %49 : vector<16x64xf32>
    %51 = math.exp %50 : vector<16x64xf32>
    %c0_21 = arith.constant 0 : index
    %c0_22 = arith.constant 0 : index
    %52 = vector.load %arg8[%c0_21, %c0_22] : memref<64x64xf32, #tpu.memory_space<vmem>>, vector<64x64xf32>
    %cst_23 = arith.constant dense<0.000000e+00> : vector<16x64xf32>
    %53 = tpu.matmul %51, %52, %cst_23 {dimension_numbers = #tpu.dot_dimension_numbers<[1], [0], [0], [1], [0, 0, 1, 1], [], []>} : vector<16x64xf32>, vector<64x64xf32>, vector<16x64xf32> -> vector<16x64xf32>
    %54 = tpu.reciprocal %53 {approx = true} : vector<16x64xf32> -> vector<16x64xf32>
    %55 = arith.mulf %51, %54 : vector<16x64xf32>
    %cst_24 = arith.constant dense<0.000000e+00> : vector<16x32xf32>
    %56 = tpu.matmul %55, %41, %cst_24 {dimension_numbers = #tpu.dot_dimension_numbers<[1], [0], [0], [1], [0, 0, 1, 1], [], []>} : vector<16x64xf32>, vector<64x32xf32>, vector<16x32xf32> -> vector<16x32xf32>
    %c0_25 = arith.constant 0 : index
    %c0_26 = arith.constant 0 : index
    %57 = vector.load %arg2[%c0_25, %c0_26] : memref<32x32xf32, #tpu.memory_space<vmem>>, vector<32x32xf32>
    %cst_27 = arith.constant dense<0.000000e+00> : vector<16x32xf32>
    %58 = tpu.matmul %56, %57, %cst_27 {dimension_numbers = #tpu.dot_dimension_numbers<[1], [0], [0], [1], [0, 0, 1, 1], [], []>} : vector<16x32xf32>, vector<32x32xf32>, vector<16x32xf32> -> vector<16x32xf32>
    %59 = vector.broadcast %6 : vector<1x32xf32> to vector<16x32xf32>
    %60 = arith.addf %58, %59 : vector<16x32xf32>
    %61 = arith.addf %0, %60 : vector<16x32xf32>
    %cst_28 = arith.constant dense<0.000000e+00> : vector<16xf32>
    %62 = vector.multi_reduction <add>, %61, %cst_28 [1] : vector<16x32xf32> to vector<16xf32>
    %63 = vector.shape_cast %62 : vector<16xf32> to vector<16x1xf32>
    %cst_29 = arith.constant 3.200000e+01 : f32
    %64 = vector.broadcast %cst_29 : f32 to vector<16x1xf32>
    %65 = arith.divf %63, %64 : vector<16x1xf32>
    %66 = vector.broadcast %65 : vector<16x1xf32> to vector<16x32xf32>
    %67 = arith.subf %61, %66 : vector<16x32xf32>
    %68 = arith.mulf %67, %67 : vector<16x32xf32>
    %cst_30 = arith.constant dense<0.000000e+00> : vector<16xf32>
    %69 = vector.multi_reduction <add>, %68, %cst_30 [1] : vector<16x32xf32> to vector<16xf32>
    %70 = vector.shape_cast %69 : vector<16xf32> to vector<16x1xf32>
    %cst_31 = arith.constant 3.200000e+01 : f32
    %71 = vector.broadcast %cst_31 : f32 to vector<16x1xf32>
    %72 = arith.divf %70, %71 : vector<16x1xf32>
    %73 = vector.broadcast %65 : vector<16x1xf32> to vector<16x32xf32>
    %74 = arith.subf %61, %73 : vector<16x32xf32>
    %cst_32 = arith.constant 9.99999974E-6 : f32
    %75 = vector.broadcast %cst_32 : f32 to vector<16x1xf32>
    %76 = arith.addf %72, %75 : vector<16x1xf32>
    %77 = math.rsqrt %76 : vector<16x1xf32>
    %78 = vector.broadcast %77 : vector<16x1xf32> to vector<16x32xf32>
    %79 = arith.mulf %74, %78 : vector<16x32xf32>
    %80 = vector.broadcast %4 : vector<1x32xf32> to vector<16x32xf32>
    %81 = arith.mulf %79, %80 : vector<16x32xf32>
    %82 = vector.broadcast %5 : vector<1x32xf32> to vector<16x32xf32>
    %83 = arith.addf %81, %82 : vector<16x32xf32>
    %c0_33 = arith.constant 0 : index
    %c0_34 = arith.constant 0 : index
    %84 = vector.load %arg3[%c0_33, %c0_34] : memref<32x64xf32, #tpu.memory_space<vmem>>, vector<32x64xf32>
    %cst_35 = arith.constant dense<0.000000e+00> : vector<16x64xf32>
    %85 = tpu.matmul %83, %84, %cst_35 {dimension_numbers = #tpu.dot_dimension_numbers<[1], [0], [0], [1], [0, 0, 1, 1], [], []>} : vector<16x32xf32>, vector<32x64xf32>, vector<16x64xf32> -> vector<16x64xf32>
    %86 = vector.broadcast %8 : vector<1x64xf32> to vector<16x64xf32>
    %87 = arith.addf %85, %86 : vector<16x64xf32>
    %cst_36 = arith.constant 0.000000e+00 : f32
    %88 = vector.broadcast %cst_36 : f32 to vector<16x64xf32>
    %89 = arith.cmpf oge, %87, %88 : vector<16x64xf32>
    %cst_37 = arith.constant 0.00999999977 : f32
    %90 = vector.broadcast %cst_37 : f32 to vector<16x64xf32>
    %91 = arith.mulf %90, %87 : vector<16x64xf32>
    %92 = arith.select %89, %87, %91 : vector<16x64xi1>, vector<16x64xf32>
    %c0_38 = arith.constant 0 : index
    %c0_39 = arith.constant 0 : index
    %93 = vector.load %arg4[%c0_38, %c0_39] : memref<64x32xf32, #tpu.memory_space<vmem>>, vector<64x32xf32>
    %cst_40 = arith.constant dense<0.000000e+00> : vector<16x32xf32>
    %94 = tpu.matmul %92, %93, %cst_40 {dimension_numbers = #tpu.dot_dimension_numbers<[1], [0], [0], [1], [0, 0, 1, 1], [], []>} : vector<16x64xf32>, vector<64x32xf32>, vector<16x32xf32> -> vector<16x32xf32>
    %95 = vector.broadcast %7 : vector<1x32xf32> to vector<16x32xf32>
    %96 = arith.addf %94, %95 : vector<16x32xf32>
    %97 = arith.addf %61, %96 : vector<16x32xf32>
    %98 = tpu.concatenate %97, %34, %35, %97 in 1 : vector<16x32xf32>, vector<16x32xf32>, vector<16x32xf32>, vector<16x32xf32> -> vector<16x128xf32>
    %c0_41 = arith.constant 0 : index
    %c0_42 = arith.constant 0 : index
    %99 = vector.load %arg10[%c0_41, %c0_42] : memref<16x128xf32, #tpu.memory_space<vmem>>, vector<16x128xf32>
    tpu.vector_store %arg10[%c0_41, %c0_42], %98 {strides = array<i32>} : memref<16x128xf32, #tpu.memory_space<vmem>>, vector<16x128xf32>,
    return
  }
}

</mosaic_0001>

<bundles_post_ra>
// kernel: block_self_attention.1
= control target key start
LH: loop header
LB: loop body
LE: loop exit
PB: predicated region body
PF: predicated region fallthrough
CT: control target
= control target key end

     0   :  { %vm38_vm0 = vcmask 261120   ;;  %v686_v4 = vmov 32.0   ;;  %vm153_vm8 = vcmask 130048   ;;  %vm339_vm9 = vcmask 523264   ;;  %s1043_s0 = inlined_call_operand.vmem [shape: f32[16,32], index: 0, kind: input, shape index: {}]   ;;  %s1044_s1 = inlined_call_operand.vmem [shape: f32[32,128], index: 1, kind: input, shape index: {}]   ;;  %s1045_s5 = inlined_call_operand.vmem [shape: f32[8,64], index: 5, kind: input, shape index: {}]   ;;  %s1046_s9 = inlined_call_operand.vmem [shape: f32[64,16], index: 9, kind: input, shape index: {}]   ;;  %s1047_s6 = inlined_call_operand.vmem [shape: f32[64,32], index: 6, kind: input, shape index: {}]   ;;  %s1048_s8 = inlined_call_operand.vmem [shape: f32[64,64], index: 8, kind: input, shape index: {}]   ;;  %s1049_s7 = inlined_call_operand.vmem [shape: f32[16,64], index: 7, kind: input, shape index: {}]   ;;  %s1050_s2 = inlined_call_operand.vmem [shape: f32[32,32], index: 2, kind: input, shape index: {}]   ;;  %s1051_s3 = inlined_call_operand.vmem [shape: f32[32,64], index: 3, kind: input, shape index: {}]   ;;  %s1052_s4 = inlined_call_operand.vmem [shape: f32[64,32], index: 4, kind: input, shape index: {}]   ;;  %s1053_s10 = inlined_call_operand.vmem [shape: f32[16,128], index: 10, kind: output, shape index: {}]  }
   0x1   :  { %v747_v0 = vld [vmem:[%s1043_s0] sm:$0xff]  ;;  %v754_v2 = vld [vmem:[%s1043_s0 + $0x8] sm:$0xff]  ;;  %668 = vrcp.f32 %v686_v4  ;;  %v99_v21 = vld [vmem:[%s1044_s1 + $0x18] sm:$0xff] }
   0x2   :  { %v39_v1 = vsel %vm38_vm0, %v747_v0, 0.0  ;;  %v42_v3 = vsel %vm38_vm0, %v754_v2, 0.0  ;;  %118 = vmatpush.msra.mxu0 %v99_v21  ;;  %v98_v22 = vld [vmem:[%s1044_s1 + $0x10] sm:$0xff]  ;;  %v97_v23 = vld [vmem:[%s1044_s1 + $0x8] sm:$0xff]  ;;  %v96_v24 = vld [vmem:[%s1044_s1] sm:$0xff]  ;;  %s687_s1 = smov 96  }
   0x3   :  { %40 = vadd.xlane.f32.xlu0 %v39_v1  ;;  %v783_v36 = vld [vmem:[%s1045_s5] sm:$0xff]  ;;  %s688_s5 = smov 64   ;;  %v138_v1 = vld [vmem:[%s1046_s9 + $0x8] sm:$0xff]  ;;  %v140_v4 = vld [vmem:[%s1046_s9 + $0x18] sm:$0xff] }
   0x4   :  { %119 = vmatpush.msra.mxu0 %v98_v22  ;;  %v90_v40 = vperm.slane %v783_v36, 0  ;;  %v93_v44 = vperm.slane %v783_v36, 1  ;;  %v137_v60 = vld [vmem:[%s1046_s9] sm:$0xff]  ;;  %v853_v22 = vld [vmem:[%s1047_s6 + $0x28] sm:$0xff] }
   0x6   :  { %120 = vmatpush.msra.mxu0 %v97_v23 }
   0x7   :  { %v669_v5 = vpop.eup %668 }
   0x8   :  { %v46_v6 = vmul.f32 32.0, %v669_v5  ;;  %vm50_vm1 = vweird.f32 %v669_v5  ;;  %121 = vmatpush.msra.mxu0 %v96_v24  ;;  %v861_v24 = vld [vmem:[%s1047_s6 + $0x20] sm:$0xff] }
   0xa   :  { %v47_v7 = vsub.f32 1.0, %v46_v6  ;;  %v142_v6 = vld [vmem:[%s1046_s9 + $0x28] sm:$0xff] }
   0xb   :  { %43 = vadd.xlane.f32.xlu0 %v42_v3  ;;  %v139_v3 = vld [vmem:[%s1046_s9 + $0x10] sm:$0xff] }
   0xc   :  { %v48_v8 = vmul.f32 %v669_v5, %v47_v7  ;;  %v143_v7 = vld [vmem:[%s1046_s9 + $0x30] sm:$0xff] }
   0xe   :  { %v49_v9 = vadd.f32 %v669_v5, %v48_v8  ;;  %v144_v8 = vld [vmem:[%s1046_s9 + $0x38] sm:$0xff] }
  0x10   :  { %v758_v10 = vsel %vm50_vm1, %v669_v5, %v49_v9  ;;  %v141_v5 = vld [vmem:[%s1046_s9 + $0x20] sm:$0xff] }
  0x76   :  { %v41_v11 = vpop.xlane.xlu0 %40 }
  0x77   :  { %v52_v12 = vmul.f32 %v758_v10, %v41_v11 }
  0x79   :  { %v54_v13 = vsub.f32 %v747_v0, %v52_v12 }
  0x7b   :  { %v56_v14 = vmul.f32 %v54_v13, %v54_v13 }
  0x7d   :  { %v58_v15 = vsel %vm38_vm0, %v56_v14, 0.0 }
  0x7e   :  { %59 = vadd.xlane.f32.xlu1 %v58_v15  ;;  %v44_v16 = vpop.xlane.xlu0 %43 }
  0x7f   :  { %v53_v17 = vmul.f32 %v758_v10, %v44_v16 }
  0x81   :  { %v55_v18 = vsub.f32 %v754_v2, %v53_v17  ;;  %v839_v17 = vld [vmem:[%s1047_s6 + $0x38] sm:$0xff] }
  0x83   :  { %v57_v19 = vmul.f32 %v55_v18, %v55_v18 }
  0x85   :  { %v61_v20 = vsel %vm38_vm0, %v57_v19, 0.0 }
  0x86   :  { %62 = vadd.xlane.f32.xlu1 %v61_v20  ;;  %v845_v20 = vld [vmem:[%s1047_s6 + $0x30] sm:$0xff] }
  0xf1   :  { %v60_v25 = vpop.xlane.xlu1 %59 }
  0xf2   :  { %v64_v26 = vmul.f32 %v60_v25, %v758_v10 }
  0xf4   :  { %v66_v27 = vadd.f32 1e-05, %v64_v26  ;;  %v869_v26 = vld [vmem:[%s1047_s6 + $0x18] sm:$0xff] }
  0xf6   :  { %670 = vrsqrt.f32 %v66_v27  ;;  %vm74_vm3 = vweird.f32 %v66_v27 }
  0xf9   :  { %v63_v28 = vpop.xlane.xlu1 %62 }
  0xfa   :  { %v65_v29 = vmul.f32 %v63_v28, %v758_v10  ;;  %v877_v28 = vld [vmem:[%s1047_s6 + $0x10] sm:$0xff] }
  0xfc   :  { %v671_v30 = vpop.eup %670  ;;  %v67_v31 = vadd.f32 1e-05, %v65_v29 }
  0xfd   :  { %v69_v32 = vmul.f32 %v671_v30, %v66_v27  ;;  %vm75_vm2 = vweird.f32 %v671_v30 }
  0xfe   :  { %672 = vrsqrt.f32 %v67_v31  ;;  %vm76_vm4 = vmor %vm74_vm3, %vm75_vm2  ;;  %vm84_vm6 = vweird.f32 %v67_v31  ;;  %vm600_vm3 = vcmask 785408  }
  0xff   :  { %v70_v33 = vmul.f32 %v671_v30, %v69_v32  ;;  %v893_v32 = vld [vmem:[%s1047_s6] sm:$0xff] }
 0x101   :  { %v71_v34 = vmul.f32 0.5, %v70_v33 }
 0x103   :  { %v72_v35 = vsub.f32 1.5, %v71_v34  ;;  %v359_v34 = vld [vmem:[%s1048_s8 + $0x38] sm:$0xff] }
 0x104   :  { %v673_v37 = vpop.eup %672  ;;  %374 = vmatpush.msrb.mxu0 %v359_v34 }
 0x105   :  { %v73_v38 = vmul.f32 %v671_v30, %v72_v35  ;;  %v79_v39 = vmul.f32 %v673_v37, %v67_v31  ;;  %vm85_vm5 = vweird.f32 %v673_v37  ;;  %v358_v35 = vld [vmem:[%s1048_s8 + $0x30] sm:$0xff] }
 0x106   :  { %vm86_vm7 = vmor %vm84_vm6, %vm85_vm5  ;;  %375 = vmatpush.msrb.mxu0 %v358_v35 }
 0x107   :  { %v77_v41 = vsel %vm76_vm4, %v671_v30, %v73_v38  ;;  %v80_v42 = vmul.f32 %v673_v37, %v79_v39  ;;  %v885_v30 = vld [vmem:[%s1047_s6 + $0x8] sm:$0xff]  ;;  %v335_v38 = vld [vmem:[%s1049_s7] sm:$0xff] }
 0x108   :  { %v88_v43 = vmul.f32 %v77_v41, %v54_v13 }
 0x109   :  { %v81_v45 = vmul.f32 0.5, %v80_v42 }
 0x10a   :  { %v91_v46 = vmul.f32 %v90_v40, %v88_v43  ;;  %v336_v43 = vld [vmem:[%s1049_s7 + $0x8] sm:$0xff] }
 0x10b   :  { %v82_v47 = vsub.f32 1.5, %v81_v45 }
 0x10c   :  { %v94_v48 = vadd.f32 %v93_v44, %v91_v46 }
 0x10d   :  { %v83_v49 = vmul.f32 %v673_v37, %v82_v47  ;;  %v357_v47 = vld [vmem:[%s1048_s8 + $0x28] sm:$0xff] }
 0x10e   :  { %609 = vmatmul.msk.f32.vlgmr.msra.gmra.mxu0 %vm38_vm0, %v94_v48  ;;  %v356_v48 = vld [vmem:[%s1048_s8 + $0x20] sm:$0xff] }
 0x10f   :  { %v87_v50 = vsel %vm86_vm7, %v673_v37, %v83_v49  ;;  %376 = vmatpush.msrb.mxu0 %v357_v47 }
 0x110   :  { %v89_v51 = vmul.f32 %v87_v50, %v55_v18  ;;  %v355_v50 = vld [vmem:[%s1048_s8 + $0x18] sm:$0xff] }
 0x111   :  { %377 = vmatpush.msrb.mxu0 %v356_v48  ;;  %v511_v48 = vld [vmem:[%s1051_s3 + $0x18] sm:$0xff] }
 0x112   :  { %v92_v52 = vmul.f32 %v90_v40, %v89_v51  ;;  %v354_v51 = vld [vmem:[%s1048_s8 + $0x10] sm:$0xff] }
 0x113   :  { %378 = vmatpush.msrb.mxu0 %v355_v50  ;;  %v509_v50 = vld [vmem:[%s1051_s3 + $0x8] sm:$0xff] }
 0x114   :  { %v95_v53 = vadd.f32 %v93_v44, %v92_v52  ;;  %v353_v52 = vld [vmem:[%s1048_s8 + $0x8] sm:$0xff] }
 0x115   :  { %379 = vmatpush.msrb.mxu0 %v354_v51  ;;  %v508_v51 = vld [vmem:[%s1051_s3] sm:$0xff] }
 0x116   :  { %610 = vmatmul.msk.f32.gmra.mxu0 %vm38_vm0, %v95_v53  ;;  %v352_v53 = vld [vmem:[%s1048_s8] sm:$0xff] }
 0x117   :  { %380 = vmatpush.msrb.mxu0 %v353_v52 }
 0x119   :  { %381 = vmatpush.msrb.mxu0 %v352_v53 }
 0x18b   :  { %v789_v54 = vpop.f32.mrf.mxu0 }
 0x193   :  { %v791_v55 = vpop.f32.mrf.mxu0 }
 0x194   :  { %v658_v56 = vpack.i.bf16 %v789_v54, %v791_v55 }
 0x196   :  { %659 = vrot.lane.b32.xlu2 %v658_v56, %s687_s1 }
 0x19e   :  { %664 = vrot.lane.b32.xlu2 %v658_v56, %s688_s5 }
 0x1f0   :  { %v660_v57 = vpop.permute.xlu2 %659 }
 0x1f1   :  { %v661_v58 = vunpack.i.l.bf16 %v660_v57  ;;  %v662_v59 = vunpack.i.h.bf16 %v660_v57 }
 0x1f3   :  { %192 = vmatpush.msra.mxu1 %v661_v58 }
 0x1f5   :  { %193 = vmatpush.msra.mxu1 %v662_v59 }
 0x1f6   :  { %611 = vmatmul.msk.f32.vlgmr.msra.gmra.mxu1 %vm153_vm8, %v137_v60 }
 0x1f8   :  { %v665_v61 = vpop.permute.xlu2 %664 }
 0x1f9   :  { %v666_v62 = vunpack.i.l.bf16 %v665_v61  ;;  %v667_v63 = vunpack.i.h.bf16 %v665_v61 }
 0x1fb   :  { %247 = vmatpush.msra.mxu2 %v666_v62 }
 0x1fd   :  { %248 = vmatpush.msra.mxu2 %v667_v63 }
 0x1fe   :  { %612 = vmatmul.msk.f32.gmra.mxu1 %vm153_vm8, %v138_v1  ;;  %619 = vmatmul.msk.f32.vlgmr.msra.gmra.mxu2 %vm153_vm8, %v137_v60 }
 0x206   :  { %613 = vmatmul.msk.f32.gmra.mxu1 %vm153_vm8, %v139_v3  ;;  %620 = vmatmul.msk.f32.gmra.mxu2 %vm153_vm8, %v138_v1 }
 0x20e   :  { %614 = vmatmul.msk.f32.gmra.mxu1 %vm153_vm8, %v140_v4  ;;  %621 = vmatmul.msk.f32.gmra.mxu2 %vm153_vm8, %v139_v3 }
 0x216   :  { %615 = vmatmul.msk.f32.gmra.mxu1 %vm153_vm8, %v141_v5  ;;  %622 = vmatmul.msk.f32.gmra.mxu2 %vm153_vm8, %v140_v4 }
 0x21e   :  { %616 = vmatmul.msk.f32.gmra.mxu1 %vm153_vm8, %v142_v6  ;;  %623 = vmatmul.msk.f32.gmra.mxu2 %vm153_vm8, %v141_v5 }
 0x226   :  { %617 = vmatmul.msk.f32.gmra.mxu1 %vm153_vm8, %v143_v7  ;;  %624 = vmatmul.msk.f32.gmra.mxu2 %vm153_vm8, %v142_v6 }
 0x22e   :  { %618 = vmatmul.msk.f32.gmra.mxu1 %vm153_vm8, %v144_v8  ;;  %625 = vmatmul.msk.f32.gmra.mxu2 %vm153_vm8, %v143_v7 }
 0x236   :  { %626 = vmatmul.msk.f32.gmra.mxu2 %vm153_vm8, %v144_v8 }
 0x273   :  { %v195_v9 = vpop.f32.mrf.mxu1 }
 0x274   :  { %v219_v33 = vmul.f32 %v195_v9, %v893_v32 }
 0x27b   :  { %v198_v11 = vpop.f32.mrf.mxu1 }
 0x27c   :  { %v220_v31 = vmul.f32 %v198_v11, %v885_v30 }
 0x281   :  { %v250_v49 = vpop.f32.mrf.mxu2 }
 0x283   :  { %v201_v12 = vpop.f32.mrf.mxu1 }
 0x284   :  { %v221_v29 = vmul.f32 %v201_v12, %v877_v28 }
 0x289   :  { %v253_v56 = vpop.f32.mrf.mxu2 }
 0x28b   :  { %v204_v13 = vpop.f32.mrf.mxu1 }
 0x28c   :  { %v222_v27 = vmul.f32 %v204_v13, %v869_v26 }
 0x291   :  { %v256_v57 = vpop.f32.mrf.mxu2 }
 0x293   :  { %v207_v14 = vpop.f32.mrf.mxu1 }
 0x294   :  { %v223_v25 = vmul.f32 %v207_v14, %v861_v24 }
 0x299   :  { %v259_v58 = vpop.f32.mrf.mxu2 }
 0x29a   :  { %v277_v14 = vmul.f32 %v259_v58, %v869_v26  ;;  %v554_v58 = vld [vmem:[%s1052_s4 + $0x30] sm:$0xff] }
 0x29b   :  { %v210_v15 = vpop.f32.mrf.mxu1 }
 0x29c   :  { %v224_v23 = vmul.f32 %v210_v15, %v853_v22  ;;  %v276_v15 = vmul.f32 %v256_v57, %v877_v28  ;;  %v555_v57 = vld [vmem:[%s1052_s4 + $0x38] sm:$0xff] }
 0x2a1   :  { %v262_v62 = vpop.f32.mrf.mxu2 }
 0x2a2   :  { %v278_v13 = vmul.f32 %v262_v62, %v861_v24  ;;  %v552_v62 = vld [vmem:[%s1052_s4 + $0x20] sm:$0xff] }
 0x2a3   :  { %v213_v16 = vpop.f32.mrf.mxu1 }
 0x2a4   :  { %v225_v21 = vmul.f32 %v213_v16, %v845_v20  ;;  %v275_v16 = vmul.f32 %v253_v56, %v885_v30  ;;  %v426_v30 = vperm.slane %v783_v36, 4 }
 0x2a9   :  { %v265_v5 = vpop.f32.mrf.mxu2 }
 0x2aa   :  { %v279_v12 = vmul.f32 %v265_v5, %v853_v22 }
 0x2ab   :  { %v216_v18 = vpop.f32.mrf.mxu1 }
 0x2ac   :  { %v226_v19 = vmul.f32 %v216_v18, %v839_v17  ;;  %v274_v18 = vmul.f32 %v250_v49, %v893_v32  ;;  %v510_v49 = vld [vmem:[%s1051_s3 + $0x10] sm:$0xff] }
 0x2ae   :  { %627 = vmatpush.xpose.msk.msrb.mxu1 %vm38_vm0, %v226_v19  ;;  %647 = vmatpush.xpose.msk.msra.mxu3 %vm38_vm0, %v226_v19  ;;  %v424_v19 = vld [vmem:[%s1050_s2 + $0x10] sm:$0xff] }
 0x2b1   :  { %v268_v7 = vpop.f32.mrf.mxu2 }
 0x2b2   :  { %628 = vmatpush.xpose.msk.msrb.mxu1 %vm38_vm0, %v225_v21  ;;  %648 = vmatpush.xpose.msk.msra.mxu3 %vm38_vm0, %v225_v21  ;;  %v280_v9 = vmul.f32 %v268_v7, %v845_v20  ;;  %v423_v20 = vld [vmem:[%s1050_s2 + $0x8] sm:$0xff] }
 0x2b6   :  { %629 = vmatpush.xpose.msk.msrb.mxu1 %vm38_vm0, %v224_v23  ;;  %649 = vmatpush.xpose.msk.msra.mxu3 %vm38_vm0, %v224_v23 }
 0x2b9   :  { %v271_v8 = vpop.f32.mrf.mxu2 }
 0x2ba   :  { %630 = vmatpush.xpose.msk.msrb.mxu1 %vm38_vm0, %v223_v25  ;;  %650 = vmatpush.xpose.msk.msra.mxu3 %vm38_vm0, %v223_v25  ;;  %v281_v11 = vmul.f32 %v271_v8, %v839_v17  ;;  %v425_v17 = vld [vmem:[%s1050_s2 + $0x18] sm:$0xff] }
 0x2bc   :  { %407 = vmatpush.msra.mxu0 %v281_v11  ;;  %v502_v11 = vperm.slane %v783_v36, 2 }
 0x2be   :  { %631 = vmatpush.xpose.msk.msrb.mxu1 %vm38_vm0, %v222_v27  ;;  %651 = vmatpush.xpose.msk.msra.mxu3 %vm38_vm0, %v222_v27  ;;  %v422_v27 = vld [vmem:[%s1050_s2] sm:$0xff] }
 0x2bf   :  { %408 = vmatpush.msra.mxu0 %v280_v9 }
 0x2c1   :  { %409 = vmatpush.msra.mxu0 %v279_v12 }
 0x2c2   :  { %632 = vmatpush.xpose.msk.msrb.mxu1 %vm38_vm0, %v221_v29  ;;  %652 = vmatpush.xpose.msk.msra.mxu3 %vm38_vm0, %v221_v29 }
 0x2c3   :  { %410 = vmatpush.msra.mxu0 %v278_v13 }
 0x2c5   :  { %411 = vmatpush.msra.mxu0 %v277_v14 }
 0x2c6   :  { %633 = vmatpush.xpose.msk.msrb.mxu1 %vm38_vm0, %v220_v31  ;;  %653 = vmatpush.xpose.msk.msra.mxu3 %vm38_vm0, %v220_v31 }
 0x2c7   :  { %412 = vmatpush.msra.mxu0 %v276_v15  ;;  %v505_v15 = vperm.slane %v783_v36, 3 }
 0x2c9   :  { %413 = vmatpush.msra.mxu0 %v275_v16 }
 0x2ca   :  { %634 = vmatpush.xpose.msk.msrb.mxu1 %vm38_vm0, %v219_v33  ;;  %654 = vmatpush.xpose.msk.msra.mxu3 %vm38_vm0, %v219_v33 }
 0x2cb   :  { %414 = vmatpush.msra.mxu0 %v274_v18 }
 0x2cd   :  { %635 = vmatmul.msk.f32.vlgmr.msrb.gmra.mxu1 %vm38_vm0, %v789_v54  ;;  %636 = vmatmul.msk.f32.vlgmr.msra.gmra.mxu3 %vm38_vm0, %v791_v55 }
 0x2ce   :  { %445 = vmatpush.msrb.mxu3 %v425_v17 }
 0x2d0   :  { %446 = vmatpush.msrb.mxu3 %v424_v19 }
 0x2d2   :  { %447 = vmatpush.msrb.mxu3 %v423_v20 }
 0x2d4   :  { %448 = vmatpush.msrb.mxu3 %v422_v27  ;;  %v548_v27 = vld [vmem:[%s1052_s4] sm:$0xff] }
 0x2d6   :  { %571 = vmatpush.msra.mxu3 %v555_v57 }
 0x2d8   :  { %572 = vmatpush.msra.mxu3 %v554_v58 }
 0x34a   :  { %v327_v37 = vpop.f32.mrf.mxu1 }
 0x34b   :  { %v333_v39 = vmul.f32 0.17677669, %v327_v37 }
 0x34d   :  { %v337_v40 = vadd.f32 %v335_v38, %v333_v39 }
 0x34f   :  { %v340_v41 = vsel %vm339_vm9, %v337_v40, -inf }
 0x350   :  { %v330_v42 = vpop.f32.mrf.mxu3  ;;  %341 = vmax.xlane.f32.xlu0 %v340_v41 }
 0x351   :  { %v334_v44 = vmul.f32 0.17677669, %v330_v42 }
 0x353   :  { %v338_v45 = vadd.f32 %v336_v43, %v334_v44 }
 0x355   :  { %v343_v46 = vsel %vm339_vm9, %v338_v45, -inf }
 0x356   :  { %344 = vmax.xlane.f32.xlu1 %v343_v46 }
 0x3c3   :  { %v342_v59 = vpop.xlane.xlu0 %341 }
 0x3c4   :  { %v346_v60 = vsub.f32 %v337_v40, %v342_v59  ;;  %v553_v59 = vld [vmem:[%s1052_s4 + $0x28] sm:$0xff] }
 0x3c5   :  { %573 = vmatpush.msra.mxu3 %v553_v59 }
 0x3c6   :  { %v348_v61 = vmul.f32 1.442695, %v346_v60 }
 0x3c7   :  { %574 = vmatpush.msra.mxu3 %v552_v62 }
 0x3c8   :  { %674 = vpow2.f32 %v348_v61 }
 0x3c9   :  { %v345_v63 = vpop.xlane.xlu1 %344 }
 0x3ca   :  { %v347_v1 = vsub.f32 %v338_v45, %v345_v63 }
 0x3cc   :  { %v350_v3 = vmul.f32 1.442695, %v347_v1 }
 0x3ce   :  { %v675_v4 = vpop.eup %674  ;;  %676 = vpow2.f32 %v350_v3  ;;  %v551_v3 = vld [vmem:[%s1052_s4 + $0x18] sm:$0xff] }
 0x3cf   :  { %637 = vmatmul.msk.f32.vlgmr.msrb.gmra.mxu0 %vm339_vm9, %v675_v4  ;;  %575 = vmatpush.msra.mxu3 %v551_v3 }
 0x3d0   :  { %531 = vmatpush.msrb.mxu0 %v511_v48 }
 0x3d2   :  { %532 = vmatpush.msrb.mxu0 %v510_v49 }
 0x3d4   :  { %v677_v6 = vpop.eup %676  ;;  %533 = vmatpush.msrb.mxu0 %v509_v50 }
 0x3d6   :  { %534 = vmatpush.msrb.mxu0 %v508_v51 }
 0x3d7   :  { %638 = vmatmul.msk.f32.gmra.mxu0 %vm339_vm9, %v677_v6 }
 0x44c   :  { %v383_v21 = vpop.f32.mrf.mxu0 }
 0x44d   :  { %678 = vrcp.f32 %v383_v21 }
 0x453   :  { %v679_v22 = vpop.eup %678 }
 0x454   :  { %v391_v23 = vmul.f32 %v679_v22, %v675_v4  ;;  %v386_v24 = vpop.f32.mrf.mxu0 }
 0x455   :  { %680 = vrcp.f32 %v386_v24 }
 0x456   :  { %639 = vmatmul.msk.f32.vlgmr.msra.gmra.mxu0 %vm339_vm9, %v391_v23 }
 0x45b   :  { %v681_v25 = vpop.eup %680 }
 0x45c   :  { %v392_v26 = vmul.f32 %v681_v25, %v677_v6  ;;  %v550_v25 = vld [vmem:[%s1052_s4 + $0x10] sm:$0xff] }
 0x45d   :  { %576 = vmatpush.msra.mxu3 %v550_v25 }
 0x45e   :  { %640 = vmatmul.msk.f32.gmra.mxu0 %vm339_vm9, %v392_v26  ;;  %v549_v26 = vld [vmem:[%s1052_s4 + $0x8] sm:$0xff] }
 0x45f   :  { %577 = vmatpush.msra.mxu3 %v549_v26 }
 0x461   :  { %578 = vmatpush.msra.mxu3 %v548_v27 }
 0x4d3   :  { %v416_v28 = vpop.f32.mrf.mxu0 }
 0x4d4   :  { %641 = vmatmul.msk.f32.vlgmr.msrb.gmra.mxu3 %vm38_vm0, %v416_v28  ;;  %v512_v28 = vperm.slane %v783_v36, 6 }
 0x4db   :  { %v419_v29 = vpop.f32.mrf.mxu0 }
 0x4dc   :  { %642 = vmatmul.msk.f32.gmra.mxu3 %vm38_vm0, %v419_v29 }
 0x557   :  { %v450_v31 = vpop.f32.mrf.mxu3 }
 0x558   :  { %v451_v32 = vadd.f32 %v450_v31, %v426_v30 }
 0x55a   :  { %v964_v33 = vadd.f32 %v451_v32, %v747_v0 }
 0x55c   :  { %v458_v34 = vsel %vm38_vm0, %v964_v33, 0.0 }
 0x55d   :  { %459 = vadd.xlane.f32.xlu2 %v458_v34 }
 0x55f   :  { %v453_v35 = vpop.f32.mrf.mxu3 }
 0x560   :  { %v454_v37 = vadd.f32 %v453_v35, %v426_v30 }
 0x562   :  { %v969_v38 = vadd.f32 %v454_v37, %v754_v2 }
 0x564   :  { %v461_v39 = vsel %vm38_vm0, %v969_v38, 0.0 }
 0x565   :  { %462 = vadd.xlane.f32.xlu0 %v461_v39 }
 0x5d0   :  { %v460_v40 = vpop.xlane.xlu2 %459 }
 0x5d1   :  { %v464_v41 = vmul.f32 %v460_v40, %v758_v10  ;;  %v556_v40 = vperm.slane %v783_v36, 5 }
 0x5d3   :  { %v466_v42 = vsub.f32 %v964_v33, %v464_v41 }
 0x5d5   :  { %v468_v0 = vmul.f32 %v466_v42, %v466_v42 }
 0x5d7   :  { %v470_v43 = vsel %vm38_vm0, %v468_v0, 0.0 }
 0x5d8   :  { %471 = vadd.xlane.f32.xlu1 %v470_v43  ;;  %v463_v44 = vpop.xlane.xlu0 %462 }
 0x5d9   :  { %v465_v45 = vmul.f32 %v463_v44, %v758_v10 }
 0x5db   :  { %v467_v46 = vsub.f32 %v969_v38, %v465_v45 }
 0x5dd   :  { %v469_v2 = vmul.f32 %v467_v46, %v467_v46 }
 0x5df   :  { %v473_v47 = vsel %vm38_vm0, %v469_v2, 0.0 }
 0x5e0   :  { %474 = vadd.xlane.f32.xlu0 %v473_v47 }
 0x64b   :  { %v472_v52 = vpop.xlane.xlu1 %471 }
 0x64c   :  { %v476_v53 = vmul.f32 %v472_v52, %v758_v10 }
 0x64e   :  { %v478_v56 = vadd.f32 1e-05, %v476_v53 }
 0x650   :  { %682 = vrsqrt.f32 %v478_v56  ;;  %vm486_vm11 = vweird.f32 %v478_v56 }
 0x653   :  { %v475_v60 = vpop.xlane.xlu0 %474 }
 0x654   :  { %v477_v61 = vmul.f32 %v475_v60, %v758_v10 }
 0x656   :  { %v683_v63 = vpop.eup %682  ;;  %v479_v1 = vadd.f32 1e-05, %v477_v61 }
 0x657   :  { %v481_v4 = vmul.f32 %v683_v63, %v478_v56  ;;  %vm487_vm10 = vweird.f32 %v683_v63 }
 0x658   :  { %684 = vrsqrt.f32 %v479_v1  ;;  %vm488_vm12 = vmor %vm486_vm11, %vm487_vm10  ;;  %vm496_vm14 = vweird.f32 %v479_v1 }
 0x659   :  { %v482_v5 = vmul.f32 %v683_v63, %v481_v4 }
 0x65b   :  { %v483_v6 = vmul.f32 0.5, %v482_v5 }
 0x65d   :  { %v484_v7 = vsub.f32 1.5, %v483_v6 }
 0x65e   :  { %v685_v10 = vpop.eup %684 }
 0x65f   :  { %v485_v8 = vmul.f32 %v683_v63, %v484_v7  ;;  %v491_v9 = vmul.f32 %v685_v10, %v479_v1  ;;  %vm497_vm13 = vweird.f32 %v685_v10 }
 0x660   :  { %vm498_vm15 = vmor %vm496_vm14, %vm497_vm13 }
 0x661   :  { %v489_v12 = vsel %vm488_vm12, %v683_v63, %v485_v8  ;;  %v492_v13 = vmul.f32 %v685_v10, %v491_v9 }
 0x662   :  { %v500_v14 = vmul.f32 %v489_v12, %v466_v42 }
 0x663   :  { %v493_v16 = vmul.f32 0.5, %v492_v13 }
 0x664   :  { %v503_v18 = vmul.f32 %v502_v11, %v500_v14 }
 0x665   :  { %v494_v17 = vsub.f32 1.5, %v493_v16 }
 0x666   :  { %v506_v19 = vadd.f32 %v505_v15, %v503_v18 }
 0x667   :  { %v495_v20 = vmul.f32 %v685_v10, %v494_v17 }
 0x668   :  { %643 = vmatmul.msk.f32.vlgmr.msrb.gmra.mxu0 %vm38_vm0, %v506_v19 }
 0x669   :  { %v499_v21 = vsel %vm498_vm15, %v685_v10, %v495_v20 }
 0x66a   :  { %v501_v22 = vmul.f32 %v499_v21, %v467_v46 }
 0x66c   :  { %v504_v23 = vmul.f32 %v502_v11, %v501_v22 }
 0x66e   :  { %v507_v24 = vadd.f32 %v505_v15, %v504_v23 }
 0x670   :  { %644 = vmatmul.msk.f32.gmra.mxu0 %vm38_vm0, %v507_v24 }
 0x6e5   :  { %v536_v29 = vpop.f32.mrf.mxu0 }
 0x6e6   :  { %v537_v30 = vadd.f32 %v536_v29, %v512_v28 }
 0x6e8   :  { %vm542_vm1 = vcmp.ge.f32.partialorder %v537_v30, 0.0  ;;  %v544_v31 = vmul.f32 0.01, %v537_v30 }
 0x6ea   :  { %v546_v32 = vsel %vm542_vm1, %v537_v30, %v544_v31 }
 0x6eb   :  { %645 = vmatmul.msk.f32.vlgmr.msra.gmra.mxu3 %vm339_vm9, %v546_v32 }
 0x6ed   :  { %v539_v34 = vpop.f32.mrf.mxu0 }
 0x6ee   :  { %v540_v35 = vadd.f32 %v539_v34, %v512_v28 }
 0x6f0   :  { %v545_v37 = vmul.f32 0.01, %v540_v35  ;;  %vm543_vm2 = vcmp.ge.f32.partialorder %v540_v35, 0.0 }
 0x6f2   :  { %v547_v39 = vsel %vm543_vm2, %v540_v35, %v545_v37 }
 0x6f3   :  { %646 = vmatmul.msk.f32.gmra.mxu3 %vm339_vm9, %v547_v39 }
 0x76e   :  { %v580_v41 = vpop.f32.mrf.mxu3 }
 0x76f   :  { %v581_v42 = vadd.f32 %v580_v41, %v556_v40 }
 0x771   :  { %v586_v0 = vadd.f32 %v581_v42, %v964_v33 }
 0x773   :  { %590 = vrot.lane.b32.xlu1 %v586_v0, %s687_s1  ;;  %v596_v46 = vsel %vm38_vm0, %v586_v0, %v789_v54 }
 0x774   :  { %v598_v36 = vsel %vm339_vm9, %v596_v46, %v789_v54 }
 0x776   :  { %v583_v43 = vpop.f32.mrf.mxu3 }
 0x777   :  { %v584_v44 = vadd.f32 %v583_v43, %v556_v40 }
 0x779   :  { %v587_v45 = vadd.f32 %v584_v44, %v969_v38 }
 0x77b   :  { %592 = vrot.lane.b32.xlu0 %v587_v45, %s687_s1  ;;  %v597_v33 = vsel %vm38_vm0, %v587_v45, %v791_v55 }
 0x77c   :  { %v599_v38 = vsel %vm339_vm9, %v597_v33, %v791_v55 }
 0x7e5   :  { %v591_v2 = vpop.permute.xlu1 %590 }
 0x7e6   :  { %v601_v47 = vsel %vm600_vm3, %v598_v36, %v591_v2 }
 0x7e7   :  { %603 = vst [vmem:[%s1053_s10] sm:$0xff] %v601_v47 }
 0x7ed   :  { %v593_v48 = vpop.permute.xlu0 %592 }
 0x7ee   :  { %v602_v49 = vsel %vm600_vm3, %v599_v38, %v593_v48 }
 0x7ef   :  { %604 = vst [vmem:[%s1053_s10 + $0x8] sm:$0xff] %v602_v49 }

</bundles_post_ra>
